<compile_context>
chip_gen: v6e
topology: v6e:2x2x1
jax: 0.10.0
libtpu: 0.0.40
codegen_flags: <defaults>
</compile_context>

<pallas_src>
import jax
import jax.numpy as jnp
from jax.experimental import pallas as pl
from jax.experimental.pallas import tpu as pltpu


def _choose_bt(B):
    """Samples fused per grid step: amortize step overhead, keep >=2 steps (v7x 2 TCs)."""
    target = min(8, max(1, B // 2))
    for bt in range(target, 0, -1):
        if B % bt == 0:
            return bt
    return 1


def _make_kernel(Bt, k, Wp, PWp):
    """Kernel closure over static conv geometry."""
    def kernel(w_ref, x_ref, o_ref):
        # w_ref : (O, KKC)     bf16  shared weight (tap-major / channel-minor), resident
        # x_ref : (Bt, C, L)   bf16  zero-padded activations, spatial dims flattened
        # o_ref : (Bt, O, PWp) f32   dense stride-1 output, lane width padded to 128x
        w = w_ref[...]
        xs = [x_ref[bb].astype(jnp.float32) for bb in range(Bt)]       # (C, L) each
        # In-register im2col: for each of the k*k taps take a statically shifted
        # lane window of every fused sample (lane-concat across samples), then
        # stack tap blocks along the contraction axis.  Assembled in f32
        # (tile-aligned 8-row chunks), cast to bf16 once at the MXU.
        # TODO(synk): assemble directly in bf16 (halves copy bytes) once Mosaic's
        # packed sublane-concat of 8-row chunks is verified on all generations.
        tap_rows = []
        for kh in range(k):
            for kw in range(k):
                s = kh * Wp + kw                                        # static shift
                parts = [xs[bb][:, s:s + PWp] for bb in range(Bt)]      # (C, PWp) each
                tap_rows.append(parts[0] if Bt == 1
                                else jnp.concatenate(parts, axis=1))    # (C, Bt*PWp)
        patches = jnp.concatenate(tap_rows, axis=0)                     # (KKC, Bt*PWp)
        # One fused matmul for all Bt samples; bf16 operands, f32 MXU accumulation.
        res = jnp.dot(w, patches.astype(jnp.bfloat16),
                      preferred_element_type=jnp.float32)               # (O, Bt*PWp)
        for bb in range(Bt):                                            # 128-aligned slices
            o_ref[bb] = res[:, bb * PWp:(bb + 1) * PWp].astype(o_ref.dtype)
    return kernel


def ada_modulation_conv(x, weight, style, stride=1, padding=1, bt=None):
    """Pallas forward. x: (B, inc, H, W); weight: (outc, inc, k, k); style: (B, inc)."""
    B, C, H, W = x.shape
    O, I, k, _ = weight.shape
    assert C == I and O == I, "reference module requires outc == inc"

    # ---- tiny batch-invariant / per-(b,o) pre-math (fuses in XLA, off the kernel) ----
    # NOTE: all-zero style rows give NaN, exactly like the PyTorch reference.
    style_n = style / jnp.max(jnp.abs(style), axis=1, keepdims=True)               # (B, C)
    w_norm = weight * (1.0 / float(I * k * k) ** 0.5
                       / jnp.max(jnp.abs(weight), axis=(1, 2, 3), keepdims=True))  # (O,C,k,k)
    S = jnp.sum(w_norm * w_norm, axis=(1, 2, 3))                                   # (O,)
    # per-(sample, out-channel) modulation*demod scale (see semantics note above)
    g = style_n * jax.lax.rsqrt(style_n * style_n * S[None, :] + 1e-8)             # (B, O)

    KK = k * k
    KKC = KK * C
    # tap-major / channel-minor flattening: column j = (kh*k + kw)*C + c
    w_flat = jnp.transpose(w_norm, (0, 2, 3, 1)).reshape(O, KKC).astype(jnp.bfloat16)

    # ---- conv geometry: dense stride-1 compute on a lane-flattened spatial axis ----
    Hp, Wp = H + 2 * padding, W + 2 * padding
    Hof, Wof = Hp - k + 1, Wp - k + 1                 # stride-1 output extents
    PW = Hof * Wp                                     # real output lanes (incl. junk cols)
    PWp = ((PW + 127) // 128) * 128                   # 128-multiple output lane width
    s_max = (k - 1) * Wp + (k - 1)
    L = ((max(Hp * Wp, s_max + PWp) + 127) // 128) * 128   # lane-aligned flattened length

    # pad + flatten + bf16-cast fuse into a single XLA pass over the activations
    xp = jnp.pad(x, ((0, 0), (0, 0), (padding, padding), (padding, padding)))
    x_flat = jnp.pad(xp.reshape(B, C, Hp * Wp),
                     ((0, 0), (0, 0), (0, L - Hp * Wp))).astype(jnp.bfloat16)

    Bt = _choose_bt(B) if bt is None else bt
    assert B % Bt == 0, "bt must divide the batch size"
    kernel = _make_kernel(Bt, k, Wp, PWp)

    cost = pl.CostEstimate(
        flops=2 * B * O * KKC * PWp,
        transcendentals=0,
        bytes_accessed=2 * B * C * L + 2 * O * KKC + 4 * B * O * PWp)

    out_flat = pl.pallas_call(
        kernel,
        out_shape=jax.ShapeDtypeStruct((B, O, PWp), x.dtype),
        grid_spec=pltpu.PrefetchScalarGridSpec(
            num_scalar_prefetch=0,
            grid=(B // Bt,),
            in_specs=[
                pl.BlockSpec((O, KKC), lambda b: (0, 0)),        # resident shared weight
                pl.BlockSpec((Bt, C, L), lambda b: (b, 0, 0)),   # Bt fused samples (bf16)
            ],
            out_specs=pl.BlockSpec((Bt, O, PWp), lambda b: (b, 0, 0)),
        ),
        compiler_params=pltpu.CompilerParams(dimension_semantics=("parallel",)),
        cost_estimate=cost,
    )(w_flat, x_flat)

    # Epilogue: strip wrap-around / padded lanes, realize the stride by subsampling
    # the dense stride-1 output, and apply the per-(b,o) scale g — all one fused
    # XLA pass over the output.
    # TODO(synk): for stride > 1 this computes a dense output and subsamples
    # (stride^2 extra MXU work); large C/H/W should add a second grid axis tiling
    # PW (v7x: 64 MiB VMEM / 32 MiB scoped default) and keep the padded layout
    # downstream so this strip pass disappears entirely.
    out = out_flat[:, :, :PW].reshape(B, O, Hof, Wp)[:, :, ::stride, :Wof:stride]
    out = (out * g[:, :, None, None]).astype(x.dtype)
    return out


def ada_modulation_conv_reference(x, weight, style, stride=1, padding=1):
    """Pure-JAX line-by-line transcription of the PyTorch forward (for verification)."""
    B = x.shape[0]
    o, i, h, w_sz = weight.shape
    style = style / jnp.max(jnp.abs(style), axis=1, keepdims=True)
    style = style.reshape((-1, i, 1, 1, 1))
    w = weight * (1 / float(i * h * w_sz) ** 0.5
                  / jnp.max(jnp.abs(weight), axis=(1, 2, 3), keepdims=True))
    outs = []
    for b in range(B):
        w_b = w * style[b, :]          # (i,1,1,1) broadcasts against the out-channel axis
        coe = jax.lax.rsqrt(jnp.sum(jnp.square(w_b), axis=(1, 2, 3)) + 1e-8
                            ).reshape(i, 1, 1, 1)
        w_b = w_b * coe
        outs.append(jax.lax.conv_general_dilated(
            x[b:b + 1], w_b, (stride, stride),
            [(padding, padding), (padding, padding)],
            dimension_numbers=("NCHW", "OIHW", "NCHW"),
            precision=jax.lax.Precision.HIGHEST))
    return jnp.concatenate(outs, axis=0)


if __name__ == "__main__":
    B, C, H, W = 4, 8, 16, 16          # inc == outc == 8 (required by the module)
    O, k, stride, padding = 8, 3, 1, 1

    key = jax.random.PRNGKey(0)
    kx, kwt, ks = jax.random.split(key, 3)
    x = jax.random.normal(kx, (B, C, H, W), dtype=jnp.float32)
    weight = jax.random.normal(kwt, (O, C, k, k), dtype=jnp.float32)
    style = jax.random.normal(ks, (B, C), dtype=jnp.float32)   # the module's self.style

    fwd = jax.jit(lambda a, b_, c_: ada_modulation_conv(
        a, b_, c_, stride=stride, padding=padding))
    out = jax.block_until_ready(fwd(x, weight, style))

    ref = jax.block_until_ready(
        ada_modulation_conv_reference(x, weight, style, stride=stride, padding=padding))

    assert out.shape == ref.shape == (B, O, H, W), (out.shape, ref.shape)
    # bf16 matmul operands (f32 accumulation) vs f32 HIGHEST reference.
    err = float(jnp.max(jnp.abs(out - ref)))
    assert jnp.allclose(out, ref, atol=3e-2, rtol=3e-2), err

    print("KERNEL_OK")
</pallas_src>

<mosaic_0001>
module attributes {stable_mosaic.version = 11 : i64} {
  func.func @kernel(%arg0: i32, %arg1: memref<8x72xbf16, #tpu.memory_space<vmem>>, %arg2: memref<2x8x512xbf16, #tpu.memory_space<vmem>>, %arg3: memref<2x8x384xf32, #tpu.memory_space<vmem>>) attributes {dimension_semantics = [#tpu.dimension_semantics<parallel>], iteration_bounds = array<i64: 2>, scalar_prefetch = 0 : i64, scratch_operands = 0 : i64, tpu.core_type = #tpu.core_type<tc>, window_params = [{pipeline_mode = #tpu.pipeline_mode<synchronous>, transform_indices = @transform_0, window_bounds = array<i64: 8, 72>}, {transform_indices = @transform_1, window_bounds = array<i64: 2, 8, 512>}, {transform_indices = @transform_2, window_bounds = array<i64: 2, 8, 384>}]} {
    %c0 = arith.constant 0 : index
    %c0_0 = arith.constant 0 : index
    %0 = vector.load %arg1[%c0, %c0_0] : memref<8x72xbf16, #tpu.memory_space<vmem>>, vector<8x72xbf16>
    %c0_1 = arith.constant 0 : index
    %c0_2 = arith.constant 0 : index
    %c0_3 = arith.constant 0 : index
    %1 = vector.load %arg2[%c0_1, %c0_2, %c0_3] : memref<2x8x512xbf16, #tpu.memory_space<vmem>>, vector<1x8x512xbf16>
    %2 = vector.shape_cast %1 : vector<1x8x512xbf16> to vector<8x512xbf16>
    %3 = arith.extf %2 : vector<8x512xbf16> to vector<8x512xf32>
    %c1 = arith.constant 1 : index
    %c0_4 = arith.constant 0 : index
    %c0_5 = arith.constant 0 : index
    %4 = vector.load %arg2[%c1, %c0_4, %c0_5] : memref<2x8x512xbf16, #tpu.memory_space<vmem>>, vector<1x8x512xbf16>
    %5 = vector.shape_cast %4 : vector<1x8x512xbf16> to vector<8x512xbf16>
    %6 = arith.extf %5 : vector<8x512xbf16> to vector<8x512xf32>
    %7 = vector.extract_strided_slice %3 {offsets = [0, 0], sizes = [8, 384], strides = [1, 1]} : vector<8x512xf32> to vector<8x384xf32>
    %8 = vector.extract_strided_slice %6 {offsets = [0, 0], sizes = [8, 384], strides = [1, 1]} : vector<8x512xf32> to vector<8x384xf32>
    %9 = tpu.concatenate %7, %8 in 1 : vector<8x384xf32>, vector<8x384xf32> -> vector<8x768xf32>
    %10 = vector.extract_strided_slice %3 {offsets = [0, 1], sizes = [8, 384], strides = [1, 1]} : vector<8x512xf32> to vector<8x384xf32>
    %11 = vector.extract_strided_slice %6 {offsets = [0, 1], sizes = [8, 384], strides = [1, 1]} : vector<8x512xf32> to vector<8x384xf32>
    %12 = tpu.concatenate %10, %11 in 1 : vector<8x384xf32>, vector<8x384xf32> -> vector<8x768xf32>
    %13 = vector.extract_strided_slice %3 {offsets = [0, 2], sizes = [8, 384], strides = [1, 1]} : vector<8x512xf32> to vector<8x384xf32>
    %14 = vector.extract_strided_slice %6 {offsets = [0, 2], sizes = [8, 384], strides = [1, 1]} : vector<8x512xf32> to vector<8x384xf32>
    %15 = tpu.concatenate %13, %14 in 1 : vector<8x384xf32>, vector<8x384xf32> -> vector<8x768xf32>
    %16 = vector.extract_strided_slice %3 {offsets = [0, 18], sizes = [8, 384], strides = [1, 1]} : vector<8x512xf32> to vector<8x384xf32>
    %17 = vector.extract_strided_slice %6 {offsets = [0, 18], sizes = [8, 384], strides = [1, 1]} : vector<8x512xf32> to vector<8x384xf32>
    %18 = tpu.concatenate %16, %17 in 1 : vector<8x384xf32>, vector<8x384xf32> -> vector<8x768xf32>
    %19 = vector.extract_strided_slice %3 {offsets = [0, 19], sizes = [8, 384], strides = [1, 1]} : vector<8x512xf32> to vector<8x384xf32>
    %20 = vector.extract_strided_slice %6 {offsets = [0, 19], sizes = [8, 384], strides = [1, 1]} : vector<8x512xf32> to vector<8x384xf32>
    %21 = tpu.concatenate %19, %20 in 1 : vector<8x384xf32>, vector<8x384xf32> -> vector<8x768xf32>
    %22 = vector.extract_strided_slice %3 {offsets = [0, 20], sizes = [8, 384], strides = [1, 1]} : vector<8x512xf32> to vector<8x384xf32>
    %23 = vector.extract_strided_slice %6 {offsets = [0, 20], sizes = [8, 384], strides = [1, 1]} : vector<8x512xf32> to vector<8x384xf32>
    %24 = tpu.concatenate %22, %23 in 1 : vector<8x384xf32>, vector<8x384xf32> -> vector<8x768xf32>
    %25 = vector.extract_strided_slice %3 {offsets = [0, 36], sizes = [8, 384], strides = [1, 1]} : vector<8x512xf32> to vector<8x384xf32>
    %26 = vector.extract_strided_slice %6 {offsets = [0, 36], sizes = [8, 384], strides = [1, 1]} : vector<8x512xf32> to vector<8x384xf32>
    %27 = tpu.concatenate %25, %26 in 1 : vector<8x384xf32>, vector<8x384xf32> -> vector<8x768xf32>
    %28 = vector.extract_strided_slice %3 {offsets = [0, 37], sizes = [8, 384], strides = [1, 1]} : vector<8x512xf32> to vector<8x384xf32>
    %29 = vector.extract_strided_slice %6 {offsets = [0, 37], sizes = [8, 384], strides = [1, 1]} : vector<8x512xf32> to vector<8x384xf32>
    %30 = tpu.concatenate %28, %29 in 1 : vector<8x384xf32>, vector<8x384xf32> -> vector<8x768xf32>
    %31 = vector.extract_strided_slice %3 {offsets = [0, 38], sizes = [8, 384], strides = [1, 1]} : vector<8x512xf32> to vector<8x384xf32>
    %32 = vector.extract_strided_slice %6 {offsets = [0, 38], sizes = [8, 384], strides = [1, 1]} : vector<8x512xf32> to vector<8x384xf32>
    %33 = tpu.concatenate %31, %32 in 1 : vector<8x384xf32>, vector<8x384xf32> -> vector<8x768xf32>
    %34 = tpu.concatenate %9, %12, %15, %18, %21, %24, %27, %30, %33 in 0 : vector<8x768xf32>, vector<8x768xf32>, vector<8x768xf32>, vector<8x768xf32>, vector<8x768xf32>, vector<8x768xf32>, vector<8x768xf32>, vector<8x768xf32>, vector<8x768xf32> -> vector<72x768xf32>
    %35 = arith.truncf %34 : vector<72x768xf32> to vector<72x768xbf16>
    %cst = arith.constant dense<0.000000e+00> : vector<8x768xf32>
    %36 = tpu.matmul %0, %35, %cst {dimension_numbers = #tpu.dot_dimension_numbers<[1], [0], [0], [1], [0, 0, 1, 1], [], []>} : vector<8x72xbf16>, vector<72x768xbf16>, vector<8x768xf32> -> vector<8x768xf32>
    %37 = vector.extract_strided_slice %36 {offsets = [0, 0], sizes = [8, 384], strides = [1, 1]} : vector<8x768xf32> to vector<8x384xf32>
    %c0_6 = arith.constant 0 : index
    %c0_7 = arith.constant 0 : index
    %c0_8 = arith.constant 0 : index
    %38 = vector.load %arg3[%c0_6, %c0_7, %c0_8] : memref<2x8x384xf32, #tpu.memory_space<vmem>>, vector<1x8x384xf32>
    %39 = vector.shape_cast %38 : vector<1x8x384xf32> to vector<8x384xf32>
    %40 = vector.shape_cast %37 : vector<8x384xf32> to vector<1x8x384xf32>
    tpu.vector_store %arg3[%c0_6, %c0_7, %c0_8], %40 {strides = array<i32>} : memref<2x8x384xf32, #tpu.memory_space<vmem>>, vector<1x8x384xf32>,
    %41 = vector.extract_strided_slice %36 {offsets = [0, 384], sizes = [8, 384], strides = [1, 1]} : vector<8x768xf32> to vector<8x384xf32>
    %c1_9 = arith.constant 1 : index
    %c0_10 = arith.constant 0 : index
    %c0_11 = arith.constant 0 : index
    %42 = vector.load %arg3[%c1_9, %c0_10, %c0_11] : memref<2x8x384xf32, #tpu.memory_space<vmem>>, vector<1x8x384xf32>
    %43 = vector.shape_cast %42 : vector<1x8x384xf32> to vector<8x384xf32>
    %44 = vector.shape_cast %41 : vector<8x384xf32> to vector<1x8x384xf32>
    tpu.vector_store %arg3[%c1_9, %c0_10, %c0_11], %44 {strides = array<i32>} : memref<2x8x384xf32, #tpu.memory_space<vmem>>, vector<1x8x384xf32>,
    return
  }
  func.func @transform_0(%arg0: i32) -> (i32, i32) {
    %c0_i32 = arith.constant 0 : i32
    %c0_i32_0 = arith.constant 0 : i32
    %c0_i32_1 = arith.constant 0 : i32
    return %c0_i32, %c0_i32_0 : i32, i32
  }
  func.func @transform_1(%arg0: i32) -> (i32, i32, i32) {
    %c0_i32 = arith.constant 0 : i32
    %c0_i32_0 = arith.constant 0 : i32
    %c0_i32_1 = arith.constant 0 : i32
    return %arg0, %c0_i32, %c0_i32_0 : i32, i32, i32
  }
  func.func @transform_2(%arg0: i32) -> (i32, i32, i32) {
    %c0_i32 = arith.constant 0 : i32
    %c0_i32_0 = arith.constant 0 : i32
    %c0_i32_1 = arith.constant 0 : i32
    return %arg0, %c0_i32, %c0_i32_0 : i32, i32, i32
  }
}

</mosaic_0001>

<bundles_post_ra>
// kernel: _lambda_.1
= control target key start
LH: loop header
LB: loop body
LE: loop exit
PB: predicated region body
PF: predicated region fallthrough
CT: control target
= control target key end

     0   :  { %s872_s9 = smov 0   ;;  %s1108_s0 = inlined_call_operand.vmem [shape: bf16[8,72], index: 0, kind: input, shape index: {}]   ;;  %s1109_s1 = inlined_call_operand.vmem [shape: bf16[4,8,512], index: 1, kind: input, shape index: {}]   ;;  %s1110_s2 = inlined_call_operand.vmem [shape: f32[4,8,384], index: 2, kind: output, shape index: {}]  }
   0x1 LB: > { %s648_s10 = sadd.s32 4294967295, %s846_s9   ;;  %p652_p0 = scmp.ge.s32.totalorder %s846_s9, 1  ;;  %s846_s9 = sphi %s872_s9, %s12_s9  }
   0x2   : > { %p114_p1 = scmp.lt.s32.totalorder %s846_s9, 3 }
   0x4   : > { %p115_p2 = pnand %p652_p0, %p114_p1 }
   0x5   : > { %s653_s11 = sshll.u32 (!%p115_p2), %s648_s10, 1  ;;  %s848_s16 = smov (!%p115_p2), 92  }
   0x6   : > { %118 = sbr.rel (%p115_p2) target bundleno = 406 (0x196), region = 28  ;;  %p139_p3 = scmp.lt.s32.totalorder (!%p115_p2), %s653_s11, 3 }
   0x7   : > { %s849_s17 = smov (!%p115_p2), 90   ;;  %s850_s18 = smov (!%p115_p2), 91  }
   0x8   : > { %s851_s19 = smov (!%p115_p2), 108   ;;  %s852_s20 = smov (!%p115_p2), 109  }
   0x9   : > { %s853_s21 = smov (!%p115_p2), 110   ;;  %s854_s22 = smov (!%p115_p2), 126  }
   0xa   : > { %s856_s23 = smov (!%p115_p2), 127  }
   0xb   : > { %s1112_s11 = smov (!%p139_p3, %s653_s11), 3  ;;  %v855_v16 = vmov 0   ;;  %vm386_vm0 = vcmask 736256   ;;  %vm328_vm1 = vcmask 752640   ;;  %vm357_vm2 = vcmask 744448  }
   0xc   : > { %s671_s12 = sshll.u32 %s1112_s11, 4  ;;  %492 = vmatprep.mubr.bf16.mxu0 %v855_v16  ;;  %533 = vmatprep.mubr.bf16.mxu1 %v855_v16  ;;  %vm441_vm3 = vcmask 1043456   ;;  %vm270_vm4 = vcmask 891904   ;;  %vm299_vm5 = vcmask 883712   ;;  %vm241_vm6 = vcmask 900096   ;;  %s672_s26 = smul.u32 24, %s1112_s11 }
   0xd   : > { %s886_s15 = scalar_lea.vmem %s1109_s1, %s671_s12  ;;  %vm212_vm7 = vcmask 1031168   ;;  %vm179_vm8 = vcmask 1039360   ;;  %vm437_vm9 = vcmask 588800  }
   0xe   : > { %v154_v0 = vld [vmem:[%s886_s15] sm:$0xff]  ;;  %v155_v1 = vld [vmem:[%s886_s15 + $0x8] sm:$0xff]  ;;  %v658_v6 = vld [vmem:[%s886_s15 + $0x10] sm:$0xff]  ;;  %s150_s29 = scalar_lea.vmem %s1110_s2, %s672_s26 }
   0xf   : > { %v890_v2 = vunpack.c.h.bf16 %v154_v0  ;;  %v892_v3 = vunpack.c.l.bf16 %v155_v1  ;;  %v894_v4 = vunpack.c.l.bf16 %v154_v0  ;;  %v159_v5 = vunpack.c.h.bf16 %v155_v1  ;;  %v659_v12 = vld [vmem:[%s886_s15 + $0x18] sm:$0xff] }
  0x10   : > { %v904_v10 = vunpack.c.l.bf16 %v658_v6  ;;  %v920_v13 = vunpack.c.l.bf16 %v659_v12  ;;  %v166_v14 = vunpack.c.h.bf16 %v659_v12  ;;  %v922_v15 = vunpack.c.h.bf16 %v658_v6 }
  0x11   : > { %v700_v7 = vpack.i.bf16 %v892_v3, %v890_v2  ;;  %v690_v8 = vpack.i.bf16 %v890_v2, %v894_v4  ;;  %v695_v9 = vpack.i.bf16 %v159_v5, %v892_v3 }
  0x12   : > { %v715_v11 = vpack.i.bf16 %v904_v10, %v894_v4  ;;  %v765_v17 = vpack.i.bf16 %v166_v14, %v920_v13  ;;  %v760_v18 = vpack.i.bf16 %v922_v15, %v904_v10  ;;  %v775_v19 = vpack.i.bf16 %v159_v5, %v166_v14 }
  0x13   : > { %701 = vrot.lane.b32.xlu1 %v700_v7, %s848_s16  ;;  %691 = vrot.lane.b32.xlu0 %v690_v8, %s849_s17  ;;  %v770_v20 = vpack.i.bf16 %v920_v13, %v922_v15 }
  0x17   : > { %706 = vrot.lane.b32.xlu1 %v700_v7, %s850_s18  ;;  %696 = vrot.lane.b32.xlu0 %v695_v9, %s849_s17 }
  0x1b   : > { %716 = vrot.lane.b32.xlu1 %v715_v11, %s850_s18  ;;  %711 = vrot.lane.b32.xlu0 %v715_v11, %s848_s16 }
  0x1f   : > { %726 = vrot.lane.b32.xlu1 %v700_v7, %s851_s19  ;;  %721 = vrot.lane.b32.xlu0 %v700_v7, %s852_s20 }
  0x23   : > { %736 = vrot.lane.b32.xlu1 %v715_v11, %s851_s19  ;;  %731 = vrot.lane.b32.xlu0 %v715_v11, %s852_s20 }
  0x27   : > { %746 = vrot.lane.b32.xlu1 %v700_v7, %s853_s21  ;;  %741 = vrot.lane.b32.xlu0 %v700_v7, %s854_s22 }
  0x2b   : > { %233 = vrot.lane.b32.xlu1 %v894_v4, %s853_s21  ;;  %751 = vrot.lane.b32.xlu0 %v715_v11, %s854_s22 }
  0x2f   : > { %171 = vrot.lane.b32.xlu1 %v894_v4, %s856_s23  ;;  %756 = vrot.lane.b32.xlu0 %v700_v7, %s856_s23 }
  0x33   : > { %766 = vrot.lane.b32.xlu1 %v765_v17, %s849_s17  ;;  %761 = vrot.lane.b32.xlu0 %v760_v18, %s849_s17 }
  0x37   : > { %776 = vrot.lane.b32.xlu1 %v775_v19, %s848_s16  ;;  %771 = vrot.lane.b32.xlu0 %v770_v20, %s848_s16 }
  0x3b   : > { %786 = vrot.lane.b32.xlu1 %v775_v19, %s850_s18  ;;  %781 = vrot.lane.b32.xlu0 %v770_v20, %s850_s18 }
  0x3f   : > { %796 = vrot.lane.b32.xlu1 %v775_v19, %s852_s20  ;;  %791 = vrot.lane.b32.xlu0 %v770_v20, %s852_s20 }
  0x43   : > { %806 = vrot.lane.b32.xlu1 %v775_v19, %s851_s19  ;;  %801 = vrot.lane.b32.xlu0 %v770_v20, %s851_s19 }
  0x47   : > { %816 = vrot.lane.b32.xlu1 %v775_v19, %s854_s22  ;;  %811 = vrot.lane.b32.xlu0 %v770_v20, %s854_s22 }
  0x4b   : > { %826 = vrot.lane.b32.xlu1 %v765_v17, %s853_s21  ;;  %821 = vrot.lane.b32.xlu0 %v760_v18, %s853_s21 }
  0x4f   : > { %831 = vrot.lane.b32.xlu1 %v760_v18, %s856_s23  ;;  %239 = vrot.lane.b32.xlu0 %v159_v5, %s853_s21 }
  0x53   : > { %177 = vrot.lane.b32.xlu1 %v159_v5, %s856_s23  ;;  %836 = vrot.lane.b32.xlu0 %v765_v17, %s856_s23 }
  0x85   : > { %v945_v21 = vpop.permute.xlu1 %701  ;;  %v692_v22 = vpop.permute.xlu0 %691 }
  0x86   : > { %v694_v23 = vunpack.i.h.bf16 %v692_v22  ;;  %v693_v24 = vunpack.i.l.bf16 %v692_v22  ;;  %v704_v25 = vunpack.i.h.bf16 %v945_v21  ;;  %v703_v26 = vunpack.i.l.bf16 %v945_v21 }
  0x88   : > { %v387_v27 = vsel %vm386_vm0, %v693_v24, %v694_v23  ;;  %v330_v35 = vsel %vm328_vm1, %v703_v26, %v704_v25 }
  0x89   : > { %v950_v28 = vpop.permute.xlu1 %706  ;;  %v952_v29 = vpop.permute.xlu0 %696  ;;  %v431_v33 = vpack.c.bf16 %v387_v27, %v387_v27 }
  0x8a   : > { %v709_v30 = vunpack.i.h.bf16 %v950_v28  ;;  %v708_v31 = vunpack.i.l.bf16 %v950_v28  ;;  %v698_v32 = vunpack.i.l.bf16 %v952_v29  ;;  %v699_v17 = vunpack.i.h.bf16 %v952_v29 }
  0x8b   : > { %v443_v42 = vsel %vm441_vm3, %v431_v33, 0 }
  0x8c   : > { %v388_v34 = vsel %vm386_vm0, %v694_v23, %v698_v32  ;;  %v359_v36 = vsel %vm357_vm2, %v708_v31, %v709_v30 }
  0x8d   : > { %v966_v37 = vpop.permute.xlu1 %716  ;;  %v968_v38 = vpop.permute.xlu0 %711  ;;  %v432_v39 = vpack.c.bf16 %v388_v34, %v388_v34  ;;  %v426_v43 = vpack.c.bf16 %v359_v36, %v330_v35 }
  0x8e   : > { %v718_v40 = vunpack.i.l.bf16 %v966_v37  ;;  %v713_v41 = vunpack.i.l.bf16 %v968_v38 }
  0x8f   : > { %660 = vmatprep.subr.msk.bf16.mxu0 %vm441_vm3, %v432_v39 }
  0x90   : > { %467 = vmatpush1.bf16.msra.mxu0 %v443_v42  ;;  %v329_v44 = vsel %vm328_vm1, %v713_v41, %v703_v26  ;;  %v358_v45 = vsel %vm357_vm2, %v718_v40, %v708_v31  ;;  %v389_v31 = vsel %vm386_vm0, %v698_v32, %v699_v17 }
  0x91   : > { %v976_v46 = vpop.permute.xlu1 %726  ;;  %v978_v47 = vpop.permute.xlu0 %721  ;;  %468 = vmatprep.subr.bf16.mxu0 %v426_v43  ;;  %v425_v48 = vpack.c.bf16 %v358_v45, %v329_v44  ;;  %v433_v41 = vpack.c.bf16 %v389_v31, %v389_v31 }
  0x92   : > { %v729_v49 = vunpack.i.h.bf16 %v976_v46  ;;  %v728_v50 = vunpack.i.l.bf16 %v976_v46  ;;  %v724_v51 = vunpack.i.h.bf16 %v978_v47  ;;  %v723_v52 = vunpack.i.l.bf16 %v978_v47 }
  0x94   : > { %469 = vmatpush1.bf16.msra.mxu0 %v425_v48  ;;  %v272_v53 = vsel %vm270_vm4, %v723_v52, %v724_v51  ;;  %v301_v54 = vsel %vm299_vm5, %v728_v50, %v729_v49 }
  0x95   : > { %v990_v55 = vpop.permute.xlu1 %736  ;;  %v992_v56 = vpop.permute.xlu0 %731  ;;  %v420_v57 = vpack.c.bf16 %v301_v54, %v272_v53 }
  0x96   : > { %v738_v58 = vunpack.i.l.bf16 %v990_v55  ;;  %v733_v59 = vunpack.i.l.bf16 %v992_v56  ;;  %v734_v28 = vunpack.i.h.bf16 %v992_v56 }
  0x97   : > { %470 = vmatprep.subr.bf16.mxu0 %v420_v57 }
  0x98   : > { %v271_v60 = vsel %vm270_vm4, %v733_v59, %v723_v52  ;;  %v300_v61 = vsel %vm299_vm5, %v738_v58, %v728_v50  ;;  %v449_v58 = vsel %vm441_vm3, %v433_v41, 0 }
  0x99   : > { %v998_v62 = vpop.permute.xlu1 %746  ;;  %v1000_v63 = vpop.permute.xlu0 %741  ;;  %v419_v0 = vpack.c.bf16 %v300_v61, %v271_v60 }
  0x9a   : > { %v749_v1 = vunpack.i.h.bf16 %v998_v62  ;;  %v748_v5 = vunpack.i.l.bf16 %v998_v62  ;;  %v744_v6 = vunpack.i.h.bf16 %v1000_v63  ;;  %v743_v7 = vunpack.i.l.bf16 %v1000_v63 }
  0x9b   : > { %471 = vmatpush1.bf16.msra.mxu0 %v419_v0 }
  0x9c   : > { %v214_v8 = vsel %vm212_vm7, %v743_v7, %v744_v6  ;;  %v243_v9 = vsel %vm241_vm6, %v748_v5, %v749_v1 }
  0x9d   : > { %v234_v11 = vpop.permute.xlu1 %233  ;;  %v1012_v12 = vpop.permute.xlu0 %751  ;;  %v414_v14 = vpack.c.bf16 %v243_v9, %v214_v8 }
  0x9e   : > { %v242_v18 = vsel %vm241_vm6, %v234_v11, %v748_v5  ;;  %v753_v19 = vunpack.i.l.bf16 %v1012_v12  ;;  %v719_v5 = vunpack.i.h.bf16 %v966_v37 }
  0x9f   : > { %472 = vmatprep.subr.bf16.mxu0 %v414_v14 }
  0xa0   : > { %v213_v20 = vsel %vm212_vm7, %v753_v19, %v743_v7  ;;  %v714_v7 = vunpack.i.h.bf16 %v968_v38 }
  0xa1   : > { %v172_v22 = vpop.permute.xlu1 %171  ;;  %v1018_v23 = vpop.permute.xlu0 %756  ;;  %v413_v24 = vpack.c.bf16 %v242_v18, %v213_v20 }
  0xa2   : > { %v759_v26 = vunpack.i.h.bf16 %v1018_v23  ;;  %v758_v27 = vunpack.i.l.bf16 %v1018_v23 }
  0xa3   : > { %473 = vmatpush1.bf16.msra.mxu0 %v413_v24 }
  0xa4   : > { %v181_v33 = vsel %vm179_vm8, %v758_v27, %v759_v26  ;;  %v180_v34 = vsel %vm179_vm8, %v172_v22, %v758_v27 }
  0xa5   : > { %v767_v35 = vpop.permute.xlu1 %766  ;;  %v762_v36 = vpop.permute.xlu0 %761  ;;  %v408_v39 = vpack.c.bf16 %v181_v33, %v890_v2  ;;  %v407_v40 = vpack.c.bf16 %v180_v34, %v894_v4  ;;  %v1037_v2 = vld [vmem:[%s1108_s0] sm:$0xf] }
  0xa6   : > { %v769_v42 = vunpack.i.h.bf16 %v767_v35  ;;  %v768_v43 = vunpack.i.l.bf16 %v767_v35  ;;  %v764_v44 = vunpack.i.h.bf16 %v762_v36  ;;  %v763_v29 = vunpack.i.l.bf16 %v762_v36 }
  0xa7   : > { %474 = vmatprep.subr.bf16.mxu0 %v408_v39 }
  0xa8   : > { %v403_v32 = vsel %vm386_vm0, %v768_v43, %v769_v42  ;;  %475 = vmatpush1.bf16.msra.mxu0 %v407_v40  ;;  %v401_v45 = vsel %vm386_vm0, %v763_v29, %v764_v44  ;;  %v402_v48 = vsel %vm386_vm0, %v764_v44, %v768_v43  ;;  %v739_v42 = vunpack.i.h.bf16 %v990_v55 }
  0xa9   : > { %v436_v50 = vpack.c.bf16 %v403_v32, %v403_v32  ;;  %v777_v52 = vpop.permute.xlu1 %776  ;;  %v772_v53 = vpop.permute.xlu0 %771  ;;  %v434_v54 = vpack.c.bf16 %v401_v45, %v401_v45  ;;  %v435_v4 = vpack.c.bf16 %v402_v48, %v402_v48 }
  0xaa   : > { %v779_v57 = vunpack.i.h.bf16 %v777_v52  ;;  %v778_v59 = vunpack.i.l.bf16 %v777_v52  ;;  %v774_v60 = vunpack.i.h.bf16 %v772_v53  ;;  %v773_v61 = vunpack.i.l.bf16 %v772_v53 }
  0xab   : > { %662 = vmatprep.subr.msk.bf16.mxu1 %vm441_vm3, %v434_v54  ;;  %664 = vmatprep.subr.msk.bf16.mxu0 %vm441_vm3, %v436_v50  ;;  %v455_v0 = vsel %vm441_vm3, %v435_v4, 0 }
  0xac   : > { %661 = vmatmul.mubr.msk.bf16.vlgmr.msra.gmra.mxu0 %vm437_vm9, %v1037_v2  ;;  %508 = vmatpush1.bf16.msra.mxu1 %v449_v58  ;;  %v344_v19 = vsel %vm328_vm1, %v773_v61, %v774_v60  ;;  %v343_v20 = vsel %vm328_vm1, %v714_v7, %v773_v61  ;;  %v345_v22 = vsel %vm328_vm1, %v774_v60, %v778_v59  ;;  %v754_v7 = vunpack.i.h.bf16 %v1012_v12 }
  0xad   : > { %549 = vmatpush1.bf16.msra.mxu0 %v455_v0  ;;  %v787_v8 = vpop.permute.xlu1 %786  ;;  %v782_v9 = vpop.permute.xlu0 %781  ;;  %574 = vmatprep.mubr.bf16.mxu0 %v855_v16  ;;  %v331_v37 = vsel %vm328_vm1, %v704_v25, %v779_v57 }
  0xae   : > { %v789_v11 = vunpack.i.h.bf16 %v787_v8  ;;  %v788_v14 = vunpack.i.l.bf16 %v787_v8  ;;  %v784_v17 = vunpack.i.h.bf16 %v782_v9  ;;  %v783_v18 = vunpack.i.l.bf16 %v782_v9 }
  0xb0   : > { %v373_v38 = vsel %vm357_vm2, %v783_v18, %v784_v17  ;;  %v372_v24 = vsel %vm357_vm2, %v719_v5, %v783_v18  ;;  %v374_v16 = vsel %vm357_vm2, %v784_v17, %v788_v14  ;;  %v360_v27 = vsel %vm357_vm2, %v709_v30, %v789_v11 }
  0xb1   : > { %v429_v31 = vpack.c.bf16 %v373_v38, %v344_v19  ;;  %v797_v33 = vpop.permute.xlu1 %796  ;;  %v792_v34 = vpop.permute.xlu0 %791  ;;  %v428_v35 = vpack.c.bf16 %v372_v24, %v343_v20  ;;  %v430_v36 = vpack.c.bf16 %v374_v16, %v345_v22  ;;  %v427_v39 = vpack.c.bf16 %v360_v27, %v331_v37 }
  0xb2   : > { %v799_v40 = vunpack.i.h.bf16 %v797_v33  ;;  %v798_v21 = vunpack.i.l.bf16 %v797_v33  ;;  %v794_v41 = vunpack.i.h.bf16 %v792_v34  ;;  %v793_v25 = vunpack.i.l.bf16 %v792_v34 }
  0xb3   : > { %509 = vmatprep.subr.bf16.mxu1 %v428_v35  ;;  %550 = vmatprep.subr.bf16.mxu0 %v430_v36 }
  0xb4   : > { %510 = vmatpush1.bf16.msra.mxu1 %v427_v39  ;;  %551 = vmatpush1.bf16.msra.mxu0 %v429_v31  ;;  %v286_v48 = vsel %vm270_vm4, %v793_v25, %v794_v41  ;;  %v285_v50 = vsel %vm270_vm4, %v734_v28, %v793_v25  ;;  %v287_v52 = vsel %vm270_vm4, %v794_v41, %v798_v21 }
  0xb5   : > { %v807_v43 = vpop.permute.xlu1 %806  ;;  %v802_v30 = vpop.permute.xlu0 %801  ;;  %v273_v53 = vsel %vm270_vm4, %v724_v51, %v799_v40 }
  0xb6   : > { %v809_v44 = vunpack.i.h.bf16 %v807_v43  ;;  %v808_v29 = vunpack.i.l.bf16 %v807_v43  ;;  %v804_v32 = vunpack.i.h.bf16 %v802_v30  ;;  %v803_v45 = vunpack.i.l.bf16 %v802_v30 }
  0xb8   : > { %v315_v55 = vsel %vm299_vm5, %v803_v45, %v804_v32  ;;  %v314_v56 = vsel %vm299_vm5, %v739_v42, %v803_v45  ;;  %v316_v54 = vsel %vm299_vm5, %v804_v32, %v808_v29  ;;  %v302_v4 = vsel %vm299_vm5, %v729_v49, %v809_v44 }
  0xb9   : > { %v423_v57 = vpack.c.bf16 %v315_v55, %v286_v48  ;;  %v817_v58 = vpop.permute.xlu1 %816  ;;  %v812_v59 = vpop.permute.xlu0 %811  ;;  %v422_v60 = vpack.c.bf16 %v314_v56, %v285_v50  ;;  %v424_v61 = vpack.c.bf16 %v316_v54, %v287_v52  ;;  %v421_v0 = vpack.c.bf16 %v302_v4, %v273_v53 }
  0xba   : > { %v814_v5 = vunpack.i.h.bf16 %v812_v59  ;;  %v813_v47 = vunpack.i.l.bf16 %v812_v59  ;;  %v818_v51 = vunpack.i.l.bf16 %v817_v58  ;;  %v819_v8 = vunpack.i.h.bf16 %v817_v58 }
  0xbb   : > { %511 = vmatprep.subr.bf16.mxu1 %v422_v60  ;;  %552 = vmatprep.subr.bf16.mxu0 %v424_v61 }
  0xbc   : > { %512 = vmatpush1.bf16.msra.mxu1 %v421_v0  ;;  %553 = vmatpush1.bf16.msra.mxu0 %v423_v57  ;;  %v228_v18 = vsel %vm212_vm7, %v813_v47, %v814_v5  ;;  %v227_v19 = vsel %vm212_vm7, %v754_v7, %v813_v47  ;;  %v229_v37 = vsel %vm212_vm7, %v814_v5, %v818_v51 }
  0xbd   : > { %v827_v9 = vpop.permute.xlu1 %826  ;;  %v822_v46 = vpop.permute.xlu0 %821  ;;  %v215_v35 = vsel %vm212_vm7, %v744_v6, %v819_v8 }
  0xbe   : > { %v829_v11 = vunpack.i.h.bf16 %v827_v9  ;;  %v828_v49 = vunpack.i.l.bf16 %v827_v9  ;;  %v824_v14 = vunpack.i.h.bf16 %v822_v46  ;;  %v823_v17 = vunpack.i.l.bf16 %v822_v46 }
  0xc0   : > { %v257_v20 = vsel %vm241_vm6, %v824_v14, %v828_v49  ;;  %v256_v22 = vsel %vm241_vm6, %v823_v17, %v824_v14  ;;  %v258_v38 = vsel %vm241_vm6, %v828_v49, %v829_v11 }
  0xc1   : > { %v417_v12 = vpack.c.bf16 %v257_v20, %v228_v18  ;;  %v832_v24 = vpop.permute.xlu1 %831  ;;  %v240_v16 = vpop.permute.xlu0 %239  ;;  %v416_v27 = vpack.c.bf16 %v256_v22, %v227_v19  ;;  %v418_v31 = vpack.c.bf16 %v258_v38, %v229_v37 }
  0xc2   : > { %v834_v33 = vunpack.i.h.bf16 %v832_v24  ;;  %v833_v34 = vunpack.i.l.bf16 %v832_v24  ;;  %v244_v36 = vsel %vm241_vm6, %v749_v1, %v240_v16 }
  0xc3   : > { %v415_v39 = vpack.c.bf16 %v244_v36, %v215_v35  ;;  %513 = vmatprep.subr.bf16.mxu1 %v416_v27  ;;  %554 = vmatprep.subr.bf16.mxu0 %v418_v31 }
  0xc4   : > { %555 = vmatpush1.bf16.msra.mxu0 %v417_v12  ;;  %v198_v40 = vsel %vm179_vm8, %v833_v34, %v834_v33 }
  0xc5   : > { %v178_v21 = vpop.permute.xlu1 %177  ;;  %v837_v41 = vpop.permute.xlu0 %836  ;;  %514 = vmatpush1.bf16.msra.mxu1 %v415_v39  ;;  %v410_v25 = vpack.c.bf16 %v198_v40, %v904_v10 }
  0xc6   : > { %v182_v63 = vsel %vm179_vm8, %v759_v26, %v178_v21  ;;  %v839_v6 = vunpack.i.h.bf16 %v837_v41  ;;  %v838_v62 = vunpack.i.l.bf16 %v837_v41 }
  0xc7   : > { %v409_v1 = vpack.c.bf16 %v182_v63, %v892_v3  ;;  %515 = vmatprep.subr.bf16.mxu1 %v410_v25 }
  0xc8   : > { %v199_v42 = vsel %vm179_vm8, %v834_v33, %v838_v62  ;;  %v200_v28 = vsel %vm179_vm8, %v838_v62, %v839_v6 }
  0xc9   : > { %v411_v43 = vpack.c.bf16 %v199_v42, %v922_v15  ;;  %516 = vmatpush1.bf16.msra.mxu1 %v409_v1  ;;  %v412_v30 = vpack.c.bf16 %v200_v28, %v920_v13 }
  0xcb   : > { %556 = vmatprep.subr.bf16.mxu0 %v412_v30 }
  0xcc   : > { %663 = vmatmul.mubr.msk.bf16.vlgmr.msra.gmra.mxu1 %vm437_vm9, %v1037_v2  ;;  %557 = vmatpush1.bf16.msra.mxu0 %v411_v43 }
  0xcf   : > { %665 = vmatmul.mubr.msk.bf16.vlgmr.msra.gmra.mxu0 %vm437_vm9, %v1037_v2 }
 0x16c   : > { %v494_v3 = vpop.f32.mrf.mxu0 }
 0x16d   : > { %583 = vst [vmem:[%s150_s29] sm:$0xff] %v494_v3 }
 0x16e   : > { %v496_v10 = vpop.f32.mrf.mxu0 }
 0x16f   : > { %584 = vst [vmem:[%s150_s29 + $0x8] sm:$0xff] %v496_v10 }
 0x170   : > { %v498_v15 = vpop.f32.mrf.mxu0 }
 0x172   : > { %v499_v23 = vpop.f32.mrf.mxu0 }
 0x18c   : > { %v535_v13 = vpop.f32.mrf.mxu1 }
 0x18d   : > { %585 = vst [vmem:[%s150_s29 + $0x10] sm:$0xff] %v535_v13 }
 0x18e   : > { %v537_v26 = vpop.f32.mrf.mxu1 }
 0x18f   : > { %666 = vst [vmem:[%s150_s29 + $0x18] sm:$0xff] %v537_v26  ;;  %v576_v44 = vpop.f32.mrf.mxu0 }
 0x190   : > { %667 = vst [vmem:[%s150_s29 + $0x20] sm:$0xff] %v576_v44  ;;  %v539_v29 = vpop.f32.mrf.mxu1 }
 0x191   : > { %v578_v32 = vpop.f32.mrf.mxu0 }
 0x192   : > { %668 = vst [vmem:[%s150_s29 + $0x28] sm:$0xff] %v578_v32  ;;  %v540_v2 = vpop.f32.mrf.mxu1 }
 0x193   : > { %v580_v45 = vpop.f32.mrf.mxu0 }
 0x195   : > { %v581_v48 = vpop.f32.mrf.mxu0 }
 0x196 PF: > { %s12_s9 = sadd.s32 1, %s846_s9  }
 0x197   : > { %p9_p4 = scmp.ge.s32.totalorder %s12_s9, 4  }
 0x199   :  { %11 = sbr.rel (!%p9_p4) target bundleno = 1 (0x1), region = 60 }

</bundles_post_ra>
